<compile_context>
chip_gen: v5e
topology: v5e:2x2
jax: 0.10.0
libtpu: 0.0.40
codegen_flags: <defaults>
</compile_context>

<pallas_src>
import functools

import jax
import jax.numpy as jnp
from jax import lax
from jax.experimental import pallas as pl
from jax.experimental.pallas import tpu as pltpu

HIDDEN = 5       # LSTM hidden size (== input feature size)
FEAT = 5         # input feature size
FC1 = 32
FC2 = 32
OUT = 5
G4 = 4 * HIDDEN  # 20 packed gate lanes (PyTorch order: i, f, g, o)
B_PAD = 8        # sublane-aligned rows per timestep

# Packed parameter buffer layout: (P_ROWS, P_COLS) f32. Every section starts on
# an 8-row (sublane tile) boundary; unused rows/lanes are zero.
P_COLS = 32
ROW_WIH = 0      # (FEAT,   G4)   LSTM input weights (pre-transposed)
ROW_WHH = 8      # (HIDDEN, G4)   LSTM recurrent weights (pre-transposed)
ROW_BG = 16      # (1,      G4)   b_ih + b_hh
ROW_FC1W = 24    # (HIDDEN, FC1)
ROW_FC1B = 32    # (1,      FC1)
ROW_FC2W = 40    # (FC1,    FC2)
ROW_FC2B = 72    # (1,      FC2)
ROW_FC3W = 80    # (FC2,    OUT)
ROW_FC3B = 112   # (1,      OUT)
P_ROWS = 120


def rnn_kernel(x_ref, p_ref, out_ref, *, T):
    """Full forward pass.

    x_ref : (T*B_PAD, FEAT) time-major input, batch zero-padded to 8 rows/step
    p_ref : (P_ROWS, P_COLS) packed LSTM + MLP parameters (layout above)
    out_ref: (B_PAD, OUT)
    """
    H = HIDDEN

    x2d = x_ref[...]                                   # (T*B_PAD, FEAT)
    w_ih = p_ref[ROW_WIH:ROW_WIH + FEAT, 0:G4]         # (FEAT, 4H)
    w_hh = p_ref[ROW_WHH:ROW_WHH + H, 0:G4]            # (H, 4H)
    b_g = p_ref[ROW_BG:ROW_BG + 1, 0:G4]               # (1, 4H)

    # Hoisted input projection: one MXU matmul covers every timestep, so only
    # the recurrence below stays on the serial dependency chain.
    gates_x = jnp.dot(x2d, w_ih, preferred_element_type=jnp.float32) + b_g

    # Hoisted broadcasts of the recurrent-weight rows for the VPU FMA
    # recurrence (JAX does not CSE broadcast_in_dim, so hoist explicitly).
    whh_rows = [jnp.broadcast_to(w_hh[j:j + 1, :], (B_PAD, G4)) for j in range(H)]

    # Hoisted per-lane activation constants: g-gate lanes [2H,3H) use tanh(x),
    # all other gates use sigmoid(x) = 0.5*tanh(0.5*x) + 0.5 -> one tanh/step.
    lane = lax.broadcasted_iota(jnp.int32, (B_PAD, G4), 1)
    is_g = (lane >= 2 * H) & (lane < 3 * H)
    pre_scale = jnp.where(is_g, 1.0, 0.5).astype(jnp.float32)
    post_mul = jnp.where(is_g, 1.0, 0.5).astype(jnp.float32)
    post_add = jnp.where(is_g, 0.0, 0.5).astype(jnp.float32)

    h = jnp.zeros((B_PAD, H), jnp.float32)
    c = jnp.zeros((B_PAD, H), jnp.float32)

    # Fully unrolled recurrence (T small & static). Per step: 5 VPU
    # broadcast-FMAs (no MXU), 1 packed-gate tanh, 1 tanh(c), elementwise math.
    for t in range(T):
        gates = gates_x[t * B_PAD:(t + 1) * B_PAD, :]  # (B_PAD, 4H), aligned
        for j in range(H):
            gates = gates + h[:, j:j + 1] * whh_rows[j]

        tg = jnp.tanh(gates * pre_scale)               # single EUP push
        act = post_mul * tg + post_add                 # i,f,o: sigmoid; g: tanh

        # PyTorch gate ordering: input, forget, cell(g), output.
        i_g = act[:, 0 * H:1 * H]
        f_g = act[:, 1 * H:2 * H]
        g_g = act[:, 2 * H:3 * H]
        o_g = act[:, 3 * H:4 * H]
        c = f_g * c + i_g * g_g
        h = o_g * jnp.tanh(c)

    # Residual: last LSTM output + last input timestep (needs HIDDEN == FEAT).
    y = h + x2d[(T - 1) * B_PAD:T * B_PAD, :]

    # MLP head (MXU): fc -> relu -> fc2 -> relu -> fc3.
    fc1w = p_ref[ROW_FC1W:ROW_FC1W + H, :]             # (H, 32)
    fc1b = p_ref[ROW_FC1B:ROW_FC1B + 1, :]             # (1, 32)
    fc2w = p_ref[ROW_FC2W:ROW_FC2W + FC1, :]           # (32, 32)
    fc2b = p_ref[ROW_FC2B:ROW_FC2B + 1, :]             # (1, 32)
    fc3w = p_ref[ROW_FC3W:ROW_FC3W + FC2, 0:OUT]       # (32, 5)
    fc3b = p_ref[ROW_FC3B:ROW_FC3B + 1, 0:OUT]         # (1, 5)

    y = jnp.maximum(jnp.dot(y, fc1w, preferred_element_type=jnp.float32) + fc1b, 0.0)
    y = jnp.maximum(jnp.dot(y, fc2w, preferred_element_type=jnp.float32) + fc2b, 0.0)
    y = jnp.dot(y, fc3w, preferred_element_type=jnp.float32) + fc3b
    out_ref[...] = y.astype(out_ref.dtype)


def rnn_forward(x, packed_params):
    """x: (B, T, F) float32 (PyTorch batch_first layout). Returns (B, OUT)."""
    B, T, F = x.shape
    assert F == FEAT and HIDDEN == FEAT, "residual h_last + x_last needs H == F"
    assert B <= B_PAD

    # Time-major, batch padded to 8 rows/timestep so every per-step slice of
    # the hoisted gate projection is a clean 8-sublane-aligned vreg read.
    x_tm = jnp.transpose(x, (1, 0, 2))                         # (T, B, F)
    x_tm = jnp.pad(x_tm, ((0, 0), (0, B_PAD - B), (0, 0)))     # (T, 8, F)
    x2d = x_tm.reshape(T * B_PAD, F)

    vmem = pl.BlockSpec(memory_space=pltpu.MemorySpace.VMEM)
    out = pl.pallas_call(
        functools.partial(rnn_kernel, T=T),
        out_shape=jax.ShapeDtypeStruct((B_PAD, OUT), jnp.float32),
        in_specs=[vmem, vmem],
        out_specs=vmem,
    )(x2d, packed_params)
    return out[:B]


def init_params(key):
    """Deterministic init mirroring PyTorch default uniform(-1/sqrt(fan), 1/sqrt(fan))."""
    ks = jax.random.split(key, 10)
    H = HIDDEN
    s_lstm = 1.0 / jnp.sqrt(H)

    def u(k, shape, scale):
        return jax.random.uniform(k, shape, jnp.float32, -scale, scale)

    # PyTorch stores W_ih as (4H, F); pre-transpose so the kernel does x @ W.
    w_ih = u(ks[0], (4 * H, FEAT), s_lstm).T          # (F, 4H)
    w_hh = u(ks[1], (4 * H, H), s_lstm).T             # (H, 4H)
    b_ih = u(ks[2], (4 * H,), s_lstm)
    b_hh = u(ks[3], (4 * H,), s_lstm)
    b_g = (b_ih + b_hh).reshape(1, 4 * H)

    s1 = 1.0 / jnp.sqrt(H)
    fc1_w = u(ks[4], (FC1, H), s1).T                  # (H, 32)
    fc1_b = u(ks[5], (FC1,), s1).reshape(1, FC1)
    s2 = 1.0 / jnp.sqrt(FC1)
    fc2_w = u(ks[6], (FC2, FC1), s2).T                # (32, 32)
    fc2_b = u(ks[7], (FC2,), s2).reshape(1, FC2)
    s3 = 1.0 / jnp.sqrt(FC2)
    fc3_w = u(ks[8], (OUT, FC2), s3).T                # (32, 5)
    fc3_b = u(ks[9], (OUT,), s3).reshape(1, OUT)

    return dict(w_ih=w_ih, w_hh=w_hh, b_g=b_g,
                fc1_w=fc1_w, fc1_b=fc1_b,
                fc2_w=fc2_w, fc2_b=fc2_b,
                fc3_w=fc3_w, fc3_b=fc3_b)


def pack_params(p):
    """Pack every weight/bias into one (P_ROWS, P_COLS) f32 buffer (one DMA)."""
    buf = jnp.zeros((P_ROWS, P_COLS), jnp.float32)
    buf = buf.at[ROW_WIH:ROW_WIH + FEAT, 0:G4].set(p["w_ih"])
    buf = buf.at[ROW_WHH:ROW_WHH + HIDDEN, 0:G4].set(p["w_hh"])
    buf = buf.at[ROW_BG, 0:G4].set(p["b_g"][0])
    buf = buf.at[ROW_FC1W:ROW_FC1W + HIDDEN, 0:FC1].set(p["fc1_w"])
    buf = buf.at[ROW_FC1B, 0:FC1].set(p["fc1_b"][0])
    buf = buf.at[ROW_FC2W:ROW_FC2W + FC1, 0:FC2].set(p["fc2_w"])
    buf = buf.at[ROW_FC2B, 0:FC2].set(p["fc2_b"][0])
    buf = buf.at[ROW_FC3W:ROW_FC3W + FC2, 0:OUT].set(p["fc3_w"])
    buf = buf.at[ROW_FC3B, 0:OUT].set(p["fc3_b"][0])
    return buf


def rnn_forward_ref(x, p):
    """Pure-JAX reference for verification (full-precision matmuls)."""
    B, T, F = x.shape
    H = HIDDEN
    hi = lax.Precision.HIGHEST

    def step(carry, xt):
        h, c = carry
        gates = (jnp.dot(xt, p["w_ih"], precision=hi)
                 + jnp.dot(h, p["w_hh"], precision=hi) + p["b_g"])
        i_g = jax.nn.sigmoid(gates[:, 0 * H:1 * H])
        f_g = jax.nn.sigmoid(gates[:, 1 * H:2 * H])
        g_g = jnp.tanh(gates[:, 2 * H:3 * H])
        o_g = jax.nn.sigmoid(gates[:, 3 * H:4 * H])
        c = f_g * c + i_g * g_g
        h = o_g * jnp.tanh(c)
        return (h, c), None

    h0 = jnp.zeros((B, H), jnp.float32)
    c0 = jnp.zeros((B, H), jnp.float32)
    (h, _), _ = lax.scan(step, (h0, c0), jnp.transpose(x, (1, 0, 2)))
    y = h + x[:, -1, :]
    y = jnp.maximum(jnp.dot(y, p["fc1_w"], precision=hi) + p["fc1_b"], 0.0)
    y = jnp.maximum(jnp.dot(y, p["fc2_w"], precision=hi) + p["fc2_b"], 0.0)
    return jnp.dot(y, p["fc3_w"], precision=hi) + p["fc3_b"]


if __name__ == "__main__":
    key = jax.random.PRNGKey(0)
    k_x, k_p = jax.random.split(key)

    B, T = 2, 8
    x = jax.random.normal(k_x, (B, T, FEAT), dtype=jnp.float32)
    params = init_params(k_p)
    packed = pack_params(params)

    out = jax.block_until_ready(rnn_forward(x, packed))
    ref = jax.block_until_ready(rnn_forward_ref(x, params))

    assert out.shape == (B, OUT)
    assert jnp.allclose(out, ref, atol=1e-5, rtol=1e-5), "mismatch vs JAX reference"
    print("KERNEL_OK")
</pallas_src>

<mosaic_0001>
module attributes {stable_mosaic.version = 11 : i64} {
  func.func @rnn_kernel(%arg0: memref<64x5xf32, #tpu.memory_space<vmem>>, %arg1: memref<120x32xf32, #tpu.memory_space<vmem>>, %arg2: memref<8x5xf32, #tpu.memory_space<vmem>>) attributes {dimension_semantics = [], scalar_prefetch = 0 : i64, scratch_operands = 0 : i64, tpu.core_type = #tpu.core_type<tc>} {
    %c0 = arith.constant 0 : index
    %c0_0 = arith.constant 0 : index
    %0 = vector.load %arg0[%c0, %c0_0] : memref<64x5xf32, #tpu.memory_space<vmem>>, vector<64x5xf32>
    %c0_1 = arith.constant 0 : index
    %c0_2 = arith.constant 0 : index
    %1 = vector.load %arg1[%c0_1, %c0_2] : memref<120x32xf32, #tpu.memory_space<vmem>>, vector<5x20xf32>
    %c8 = arith.constant 8 : index
    %c0_3 = arith.constant 0 : index
    %2 = vector.load %arg1[%c8, %c0_3] : memref<120x32xf32, #tpu.memory_space<vmem>>, vector<5x20xf32>
    %c16 = arith.constant 16 : index
    %c0_4 = arith.constant 0 : index
    %3 = vector.load %arg1[%c16, %c0_4] : memref<120x32xf32, #tpu.memory_space<vmem>>, vector<1x20xf32>
    %cst = arith.constant dense<0.000000e+00> : vector<64x20xf32>
    %4 = tpu.matmul %0, %1, %cst {dimension_numbers = #tpu.dot_dimension_numbers<[1], [0], [0], [1], [0, 0, 1, 1], [], []>} : vector<64x5xf32>, vector<5x20xf32>, vector<64x20xf32> -> vector<64x20xf32>
    %5 = vector.broadcast %3 : vector<1x20xf32> to vector<64x20xf32>
    %6 = arith.addf %4, %5 : vector<64x20xf32>
    %7 = vector.extract_strided_slice %2 {offsets = [0, 0], sizes = [1, 20], strides = [1, 1]} : vector<5x20xf32> to vector<1x20xf32>
    %8 = vector.shape_cast %7 : vector<1x20xf32> to vector<1x20xf32>
    %9 = vector.broadcast %8 : vector<1x20xf32> to vector<8x20xf32>
    %10 = vector.extract_strided_slice %2 {offsets = [1, 0], sizes = [1, 20], strides = [1, 1]} : vector<5x20xf32> to vector<1x20xf32>
    %11 = vector.shape_cast %10 : vector<1x20xf32> to vector<1x20xf32>
    %12 = vector.broadcast %11 : vector<1x20xf32> to vector<8x20xf32>
    %13 = vector.extract_strided_slice %2 {offsets = [2, 0], sizes = [1, 20], strides = [1, 1]} : vector<5x20xf32> to vector<1x20xf32>
    %14 = vector.shape_cast %13 : vector<1x20xf32> to vector<1x20xf32>
    %15 = vector.broadcast %14 : vector<1x20xf32> to vector<8x20xf32>
    %16 = vector.extract_strided_slice %2 {offsets = [3, 0], sizes = [1, 20], strides = [1, 1]} : vector<5x20xf32> to vector<1x20xf32>
    %17 = vector.shape_cast %16 : vector<1x20xf32> to vector<1x20xf32>
    %18 = vector.broadcast %17 : vector<1x20xf32> to vector<8x20xf32>
    %19 = vector.extract_strided_slice %2 {offsets = [4, 0], sizes = [1, 20], strides = [1, 1]} : vector<5x20xf32> to vector<1x20xf32>
    %20 = vector.shape_cast %19 : vector<1x20xf32> to vector<1x20xf32>
    %21 = vector.broadcast %20 : vector<1x20xf32> to vector<8x20xf32>
    %22 = tpu.iota {dimensions = array<i32: 1>} : vector<8x20xi32>
    %c10_i32 = arith.constant 10 : i32
    %23 = vector.broadcast %c10_i32 : i32 to vector<8x20xi32>
    %24 = arith.cmpi sge, %22, %23 : vector<8x20xi32>
    %c15_i32 = arith.constant 15 : i32
    %25 = vector.broadcast %c15_i32 : i32 to vector<8x20xi32>
    %26 = arith.cmpi slt, %22, %25 : vector<8x20xi32>
    %27 = arith.andi %24, %26 : vector<8x20xi1>
    %cst_5 = arith.constant 1.000000e+00 : f32
    %cst_6 = arith.constant 5.000000e-01 : f32
    %28 = vector.broadcast %cst_5 : f32 to vector<8x20xf32>
    %29 = vector.broadcast %cst_6 : f32 to vector<8x20xf32>
    %30 = arith.select %27, %28, %29 : vector<8x20xi1>, vector<8x20xf32>
    %cst_7 = arith.constant 1.000000e+00 : f32
    %cst_8 = arith.constant 5.000000e-01 : f32
    %31 = vector.broadcast %cst_7 : f32 to vector<8x20xf32>
    %32 = vector.broadcast %cst_8 : f32 to vector<8x20xf32>
    %33 = arith.select %27, %31, %32 : vector<8x20xi1>, vector<8x20xf32>
    %cst_9 = arith.constant 0.000000e+00 : f32
    %cst_10 = arith.constant 5.000000e-01 : f32
    %34 = vector.broadcast %cst_9 : f32 to vector<8x20xf32>
    %35 = vector.broadcast %cst_10 : f32 to vector<8x20xf32>
    %36 = arith.select %27, %34, %35 : vector<8x20xi1>, vector<8x20xf32>
    %cst_11 = arith.constant 0.000000e+00 : f32
    %37 = vector.broadcast %cst_11 : f32 to vector<8x5xf32>
    %cst_12 = arith.constant 0.000000e+00 : f32
    %38 = vector.broadcast %cst_12 : f32 to vector<8x5xf32>
    %39 = vector.extract_strided_slice %6 {offsets = [0, 0], sizes = [8, 20], strides = [1, 1]} : vector<64x20xf32> to vector<8x20xf32>
    %40 = vector.extract_strided_slice %37 {offsets = [0, 0], sizes = [8, 1], strides = [1, 1]} : vector<8x5xf32> to vector<8x1xf32>
    %41 = vector.broadcast %40 : vector<8x1xf32> to vector<8x20xf32>
    %42 = arith.mulf %41, %9 : vector<8x20xf32>
    %43 = arith.addf %39, %42 : vector<8x20xf32>
    %44 = vector.extract_strided_slice %37 {offsets = [0, 1], sizes = [8, 1], strides = [1, 1]} : vector<8x5xf32> to vector<8x1xf32>
    %45 = vector.broadcast %44 : vector<8x1xf32> to vector<8x20xf32>
    %46 = arith.mulf %45, %12 : vector<8x20xf32>
    %47 = arith.addf %43, %46 : vector<8x20xf32>
    %48 = vector.extract_strided_slice %37 {offsets = [0, 2], sizes = [8, 1], strides = [1, 1]} : vector<8x5xf32> to vector<8x1xf32>
    %49 = vector.broadcast %48 : vector<8x1xf32> to vector<8x20xf32>
    %50 = arith.mulf %49, %15 : vector<8x20xf32>
    %51 = arith.addf %47, %50 : vector<8x20xf32>
    %52 = vector.extract_strided_slice %37 {offsets = [0, 3], sizes = [8, 1], strides = [1, 1]} : vector<8x5xf32> to vector<8x1xf32>
    %53 = vector.broadcast %52 : vector<8x1xf32> to vector<8x20xf32>
    %54 = arith.mulf %53, %18 : vector<8x20xf32>
    %55 = arith.addf %51, %54 : vector<8x20xf32>
    %56 = vector.extract_strided_slice %37 {offsets = [0, 4], sizes = [8, 1], strides = [1, 1]} : vector<8x5xf32> to vector<8x1xf32>
    %57 = vector.broadcast %56 : vector<8x1xf32> to vector<8x20xf32>
    %58 = arith.mulf %57, %21 : vector<8x20xf32>
    %59 = arith.addf %55, %58 : vector<8x20xf32>
    %60 = arith.mulf %59, %30 : vector<8x20xf32>
    %61 = math.tanh %60 : vector<8x20xf32>
    %62 = arith.mulf %33, %61 : vector<8x20xf32>
    %63 = arith.addf %62, %36 : vector<8x20xf32>
    %64 = vector.extract_strided_slice %63 {offsets = [0, 0], sizes = [8, 5], strides = [1, 1]} : vector<8x20xf32> to vector<8x5xf32>
    %65 = vector.extract_strided_slice %63 {offsets = [0, 5], sizes = [8, 5], strides = [1, 1]} : vector<8x20xf32> to vector<8x5xf32>
    %66 = vector.extract_strided_slice %63 {offsets = [0, 10], sizes = [8, 5], strides = [1, 1]} : vector<8x20xf32> to vector<8x5xf32>
    %67 = vector.extract_strided_slice %63 {offsets = [0, 15], sizes = [8, 5], strides = [1, 1]} : vector<8x20xf32> to vector<8x5xf32>
    %68 = arith.mulf %65, %38 : vector<8x5xf32>
    %69 = arith.mulf %64, %66 : vector<8x5xf32>
    %70 = arith.addf %68, %69 : vector<8x5xf32>
    %71 = math.tanh %70 : vector<8x5xf32>
    %72 = arith.mulf %67, %71 : vector<8x5xf32>
    %73 = vector.extract_strided_slice %6 {offsets = [8, 0], sizes = [8, 20], strides = [1, 1]} : vector<64x20xf32> to vector<8x20xf32>
    %74 = vector.extract_strided_slice %72 {offsets = [0, 0], sizes = [8, 1], strides = [1, 1]} : vector<8x5xf32> to vector<8x1xf32>
    %75 = vector.broadcast %74 : vector<8x1xf32> to vector<8x20xf32>
    %76 = arith.mulf %75, %9 : vector<8x20xf32>
    %77 = arith.addf %73, %76 : vector<8x20xf32>
    %78 = vector.extract_strided_slice %72 {offsets = [0, 1], sizes = [8, 1], strides = [1, 1]} : vector<8x5xf32> to vector<8x1xf32>
    %79 = vector.broadcast %78 : vector<8x1xf32> to vector<8x20xf32>
    %80 = arith.mulf %79, %12 : vector<8x20xf32>
    %81 = arith.addf %77, %80 : vector<8x20xf32>
    %82 = vector.extract_strided_slice %72 {offsets = [0, 2], sizes = [8, 1], strides = [1, 1]} : vector<8x5xf32> to vector<8x1xf32>
    %83 = vector.broadcast %82 : vector<8x1xf32> to vector<8x20xf32>
    %84 = arith.mulf %83, %15 : vector<8x20xf32>
    %85 = arith.addf %81, %84 : vector<8x20xf32>
    %86 = vector.extract_strided_slice %72 {offsets = [0, 3], sizes = [8, 1], strides = [1, 1]} : vector<8x5xf32> to vector<8x1xf32>
    %87 = vector.broadcast %86 : vector<8x1xf32> to vector<8x20xf32>
    %88 = arith.mulf %87, %18 : vector<8x20xf32>
    %89 = arith.addf %85, %88 : vector<8x20xf32>
    %90 = vector.extract_strided_slice %72 {offsets = [0, 4], sizes = [8, 1], strides = [1, 1]} : vector<8x5xf32> to vector<8x1xf32>
    %91 = vector.broadcast %90 : vector<8x1xf32> to vector<8x20xf32>
    %92 = arith.mulf %91, %21 : vector<8x20xf32>
    %93 = arith.addf %89, %92 : vector<8x20xf32>
    %94 = arith.mulf %93, %30 : vector<8x20xf32>
    %95 = math.tanh %94 : vector<8x20xf32>
    %96 = arith.mulf %33, %95 : vector<8x20xf32>
    %97 = arith.addf %96, %36 : vector<8x20xf32>
    %98 = vector.extract_strided_slice %97 {offsets = [0, 0], sizes = [8, 5], strides = [1, 1]} : vector<8x20xf32> to vector<8x5xf32>
    %99 = vector.extract_strided_slice %97 {offsets = [0, 5], sizes = [8, 5], strides = [1, 1]} : vector<8x20xf32> to vector<8x5xf32>
    %100 = vector.extract_strided_slice %97 {offsets = [0, 10], sizes = [8, 5], strides = [1, 1]} : vector<8x20xf32> to vector<8x5xf32>
    %101 = vector.extract_strided_slice %97 {offsets = [0, 15], sizes = [8, 5], strides = [1, 1]} : vector<8x20xf32> to vector<8x5xf32>
    %102 = arith.mulf %99, %70 : vector<8x5xf32>
    %103 = arith.mulf %98, %100 : vector<8x5xf32>
    %104 = arith.addf %102, %103 : vector<8x5xf32>
    %105 = math.tanh %104 : vector<8x5xf32>
    %106 = arith.mulf %101, %105 : vector<8x5xf32>
    %107 = vector.extract_strided_slice %6 {offsets = [16, 0], sizes = [8, 20], strides = [1, 1]} : vector<64x20xf32> to vector<8x20xf32>
    %108 = vector.extract_strided_slice %106 {offsets = [0, 0], sizes = [8, 1], strides = [1, 1]} : vector<8x5xf32> to vector<8x1xf32>
    %109 = vector.broadcast %108 : vector<8x1xf32> to vector<8x20xf32>
    %110 = arith.mulf %109, %9 : vector<8x20xf32>
    %111 = arith.addf %107, %110 : vector<8x20xf32>
    %112 = vector.extract_strided_slice %106 {offsets = [0, 1], sizes = [8, 1], strides = [1, 1]} : vector<8x5xf32> to vector<8x1xf32>
    %113 = vector.broadcast %112 : vector<8x1xf32> to vector<8x20xf32>
    %114 = arith.mulf %113, %12 : vector<8x20xf32>
    %115 = arith.addf %111, %114 : vector<8x20xf32>
    %116 = vector.extract_strided_slice %106 {offsets = [0, 2], sizes = [8, 1], strides = [1, 1]} : vector<8x5xf32> to vector<8x1xf32>
    %117 = vector.broadcast %116 : vector<8x1xf32> to vector<8x20xf32>
    %118 = arith.mulf %117, %15 : vector<8x20xf32>
    %119 = arith.addf %115, %118 : vector<8x20xf32>
    %120 = vector.extract_strided_slice %106 {offsets = [0, 3], sizes = [8, 1], strides = [1, 1]} : vector<8x5xf32> to vector<8x1xf32>
    %121 = vector.broadcast %120 : vector<8x1xf32> to vector<8x20xf32>
    %122 = arith.mulf %121, %18 : vector<8x20xf32>
    %123 = arith.addf %119, %122 : vector<8x20xf32>
    %124 = vector.extract_strided_slice %106 {offsets = [0, 4], sizes = [8, 1], strides = [1, 1]} : vector<8x5xf32> to vector<8x1xf32>
    %125 = vector.broadcast %124 : vector<8x1xf32> to vector<8x20xf32>
    %126 = arith.mulf %125, %21 : vector<8x20xf32>
    %127 = arith.addf %123, %126 : vector<8x20xf32>
    %128 = arith.mulf %127, %30 : vector<8x20xf32>
    %129 = math.tanh %128 : vector<8x20xf32>
    %130 = arith.mulf %33, %129 : vector<8x20xf32>
    %131 = arith.addf %130, %36 : vector<8x20xf32>
    %132 = vector.extract_strided_slice %131 {offsets = [0, 0], sizes = [8, 5], strides = [1, 1]} : vector<8x20xf32> to vector<8x5xf32>
    %133 = vector.extract_strided_slice %131 {offsets = [0, 5], sizes = [8, 5], strides = [1, 1]} : vector<8x20xf32> to vector<8x5xf32>
    %134 = vector.extract_strided_slice %131 {offsets = [0, 10], sizes = [8, 5], strides = [1, 1]} : vector<8x20xf32> to vector<8x5xf32>
    %135 = vector.extract_strided_slice %131 {offsets = [0, 15], sizes = [8, 5], strides = [1, 1]} : vector<8x20xf32> to vector<8x5xf32>
    %136 = arith.mulf %133, %104 : vector<8x5xf32>
    %137 = arith.mulf %132, %134 : vector<8x5xf32>
    %138 = arith.addf %136, %137 : vector<8x5xf32>
    %139 = math.tanh %138 : vector<8x5xf32>
    %140 = arith.mulf %135, %139 : vector<8x5xf32>
    %141 = vector.extract_strided_slice %6 {offsets = [24, 0], sizes = [8, 20], strides = [1, 1]} : vector<64x20xf32> to vector<8x20xf32>
    %142 = vector.extract_strided_slice %140 {offsets = [0, 0], sizes = [8, 1], strides = [1, 1]} : vector<8x5xf32> to vector<8x1xf32>
    %143 = vector.broadcast %142 : vector<8x1xf32> to vector<8x20xf32>
    %144 = arith.mulf %143, %9 : vector<8x20xf32>
    %145 = arith.addf %141, %144 : vector<8x20xf32>
    %146 = vector.extract_strided_slice %140 {offsets = [0, 1], sizes = [8, 1], strides = [1, 1]} : vector<8x5xf32> to vector<8x1xf32>
    %147 = vector.broadcast %146 : vector<8x1xf32> to vector<8x20xf32>
    %148 = arith.mulf %147, %12 : vector<8x20xf32>
    %149 = arith.addf %145, %148 : vector<8x20xf32>
    %150 = vector.extract_strided_slice %140 {offsets = [0, 2], sizes = [8, 1], strides = [1, 1]} : vector<8x5xf32> to vector<8x1xf32>
    %151 = vector.broadcast %150 : vector<8x1xf32> to vector<8x20xf32>
    %152 = arith.mulf %151, %15 : vector<8x20xf32>
    %153 = arith.addf %149, %152 : vector<8x20xf32>
    %154 = vector.extract_strided_slice %140 {offsets = [0, 3], sizes = [8, 1], strides = [1, 1]} : vector<8x5xf32> to vector<8x1xf32>
    %155 = vector.broadcast %154 : vector<8x1xf32> to vector<8x20xf32>
    %156 = arith.mulf %155, %18 : vector<8x20xf32>
    %157 = arith.addf %153, %156 : vector<8x20xf32>
    %158 = vector.extract_strided_slice %140 {offsets = [0, 4], sizes = [8, 1], strides = [1, 1]} : vector<8x5xf32> to vector<8x1xf32>
    %159 = vector.broadcast %158 : vector<8x1xf32> to vector<8x20xf32>
    %160 = arith.mulf %159, %21 : vector<8x20xf32>
    %161 = arith.addf %157, %160 : vector<8x20xf32>
    %162 = arith.mulf %161, %30 : vector<8x20xf32>
    %163 = math.tanh %162 : vector<8x20xf32>
    %164 = arith.mulf %33, %163 : vector<8x20xf32>
    %165 = arith.addf %164, %36 : vector<8x20xf32>
    %166 = vector.extract_strided_slice %165 {offsets = [0, 0], sizes = [8, 5], strides = [1, 1]} : vector<8x20xf32> to vector<8x5xf32>
    %167 = vector.extract_strided_slice %165 {offsets = [0, 5], sizes = [8, 5], strides = [1, 1]} : vector<8x20xf32> to vector<8x5xf32>
    %168 = vector.extract_strided_slice %165 {offsets = [0, 10], sizes = [8, 5], strides = [1, 1]} : vector<8x20xf32> to vector<8x5xf32>
    %169 = vector.extract_strided_slice %165 {offsets = [0, 15], sizes = [8, 5], strides = [1, 1]} : vector<8x20xf32> to vector<8x5xf32>
    %170 = arith.mulf %167, %138 : vector<8x5xf32>
    %171 = arith.mulf %166, %168 : vector<8x5xf32>
    %172 = arith.addf %170, %171 : vector<8x5xf32>
    %173 = math.tanh %172 : vector<8x5xf32>
    %174 = arith.mulf %169, %173 : vector<8x5xf32>
    %175 = vector.extract_strided_slice %6 {offsets = [32, 0], sizes = [8, 20], strides = [1, 1]} : vector<64x20xf32> to vector<8x20xf32>
    %176 = vector.extract_strided_slice %174 {offsets = [0, 0], sizes = [8, 1], strides = [1, 1]} : vector<8x5xf32> to vector<8x1xf32>
    %177 = vector.broadcast %176 : vector<8x1xf32> to vector<8x20xf32>
    %178 = arith.mulf %177, %9 : vector<8x20xf32>
    %179 = arith.addf %175, %178 : vector<8x20xf32>
    %180 = vector.extract_strided_slice %174 {offsets = [0, 1], sizes = [8, 1], strides = [1, 1]} : vector<8x5xf32> to vector<8x1xf32>
    %181 = vector.broadcast %180 : vector<8x1xf32> to vector<8x20xf32>
    %182 = arith.mulf %181, %12 : vector<8x20xf32>
    %183 = arith.addf %179, %182 : vector<8x20xf32>
    %184 = vector.extract_strided_slice %174 {offsets = [0, 2], sizes = [8, 1], strides = [1, 1]} : vector<8x5xf32> to vector<8x1xf32>
    %185 = vector.broadcast %184 : vector<8x1xf32> to vector<8x20xf32>
    %186 = arith.mulf %185, %15 : vector<8x20xf32>
    %187 = arith.addf %183, %186 : vector<8x20xf32>
    %188 = vector.extract_strided_slice %174 {offsets = [0, 3], sizes = [8, 1], strides = [1, 1]} : vector<8x5xf32> to vector<8x1xf32>
    %189 = vector.broadcast %188 : vector<8x1xf32> to vector<8x20xf32>
    %190 = arith.mulf %189, %18 : vector<8x20xf32>
    %191 = arith.addf %187, %190 : vector<8x20xf32>
    %192 = vector.extract_strided_slice %174 {offsets = [0, 4], sizes = [8, 1], strides = [1, 1]} : vector<8x5xf32> to vector<8x1xf32>
    %193 = vector.broadcast %192 : vector<8x1xf32> to vector<8x20xf32>
    %194 = arith.mulf %193, %21 : vector<8x20xf32>
    %195 = arith.addf %191, %194 : vector<8x20xf32>
    %196 = arith.mulf %195, %30 : vector<8x20xf32>
    %197 = math.tanh %196 : vector<8x20xf32>
    %198 = arith.mulf %33, %197 : vector<8x20xf32>
    %199 = arith.addf %198, %36 : vector<8x20xf32>
    %200 = vector.extract_strided_slice %199 {offsets = [0, 0], sizes = [8, 5], strides = [1, 1]} : vector<8x20xf32> to vector<8x5xf32>
    %201 = vector.extract_strided_slice %199 {offsets = [0, 5], sizes = [8, 5], strides = [1, 1]} : vector<8x20xf32> to vector<8x5xf32>
    %202 = vector.extract_strided_slice %199 {offsets = [0, 10], sizes = [8, 5], strides = [1, 1]} : vector<8x20xf32> to vector<8x5xf32>
    %203 = vector.extract_strided_slice %199 {offsets = [0, 15], sizes = [8, 5], strides = [1, 1]} : vector<8x20xf32> to vector<8x5xf32>
    %204 = arith.mulf %201, %172 : vector<8x5xf32>
    %205 = arith.mulf %200, %202 : vector<8x5xf32>
    %206 = arith.addf %204, %205 : vector<8x5xf32>
    %207 = math.tanh %206 : vector<8x5xf32>
    %208 = arith.mulf %203, %207 : vector<8x5xf32>
    %209 = vector.extract_strided_slice %6 {offsets = [40, 0], sizes = [8, 20], strides = [1, 1]} : vector<64x20xf32> to vector<8x20xf32>
    %210 = vector.extract_strided_slice %208 {offsets = [0, 0], sizes = [8, 1], strides = [1, 1]} : vector<8x5xf32> to vector<8x1xf32>
    %211 = vector.broadcast %210 : vector<8x1xf32> to vector<8x20xf32>
    %212 = arith.mulf %211, %9 : vector<8x20xf32>
    %213 = arith.addf %209, %212 : vector<8x20xf32>
    %214 = vector.extract_strided_slice %208 {offsets = [0, 1], sizes = [8, 1], strides = [1, 1]} : vector<8x5xf32> to vector<8x1xf32>
    %215 = vector.broadcast %214 : vector<8x1xf32> to vector<8x20xf32>
    %216 = arith.mulf %215, %12 : vector<8x20xf32>
    %217 = arith.addf %213, %216 : vector<8x20xf32>
    %218 = vector.extract_strided_slice %208 {offsets = [0, 2], sizes = [8, 1], strides = [1, 1]} : vector<8x5xf32> to vector<8x1xf32>
    %219 = vector.broadcast %218 : vector<8x1xf32> to vector<8x20xf32>
    %220 = arith.mulf %219, %15 : vector<8x20xf32>
    %221 = arith.addf %217, %220 : vector<8x20xf32>
    %222 = vector.extract_strided_slice %208 {offsets = [0, 3], sizes = [8, 1], strides = [1, 1]} : vector<8x5xf32> to vector<8x1xf32>
    %223 = vector.broadcast %222 : vector<8x1xf32> to vector<8x20xf32>
    %224 = arith.mulf %223, %18 : vector<8x20xf32>
    %225 = arith.addf %221, %224 : vector<8x20xf32>
    %226 = vector.extract_strided_slice %208 {offsets = [0, 4], sizes = [8, 1], strides = [1, 1]} : vector<8x5xf32> to vector<8x1xf32>
    %227 = vector.broadcast %226 : vector<8x1xf32> to vector<8x20xf32>
    %228 = arith.mulf %227, %21 : vector<8x20xf32>
    %229 = arith.addf %225, %228 : vector<8x20xf32>
    %230 = arith.mulf %229, %30 : vector<8x20xf32>
    %231 = math.tanh %230 : vector<8x20xf32>
    %232 = arith.mulf %33, %231 : vector<8x20xf32>
    %233 = arith.addf %232, %36 : vector<8x20xf32>
    %234 = vector.extract_strided_slice %233 {offsets = [0, 0], sizes = [8, 5], strides = [1, 1]} : vector<8x20xf32> to vector<8x5xf32>
    %235 = vector.extract_strided_slice %233 {offsets = [0, 5], sizes = [8, 5], strides = [1, 1]} : vector<8x20xf32> to vector<8x5xf32>
    %236 = vector.extract_strided_slice %233 {offsets = [0, 10], sizes = [8, 5], strides = [1, 1]} : vector<8x20xf32> to vector<8x5xf32>
    %237 = vector.extract_strided_slice %233 {offsets = [0, 15], sizes = [8, 5], strides = [1, 1]} : vector<8x20xf32> to vector<8x5xf32>
    %238 = arith.mulf %235, %206 : vector<8x5xf32>
    %239 = arith.mulf %234, %236 : vector<8x5xf32>
    %240 = arith.addf %238, %239 : vector<8x5xf32>
    %241 = math.tanh %240 : vector<8x5xf32>
    %242 = arith.mulf %237, %241 : vector<8x5xf32>
    %243 = vector.extract_strided_slice %6 {offsets = [48, 0], sizes = [8, 20], strides = [1, 1]} : vector<64x20xf32> to vector<8x20xf32>
    %244 = vector.extract_strided_slice %242 {offsets = [0, 0], sizes = [8, 1], strides = [1, 1]} : vector<8x5xf32> to vector<8x1xf32>
    %245 = vector.broadcast %244 : vector<8x1xf32> to vector<8x20xf32>
    %246 = arith.mulf %245, %9 : vector<8x20xf32>
    %247 = arith.addf %243, %246 : vector<8x20xf32>
    %248 = vector.extract_strided_slice %242 {offsets = [0, 1], sizes = [8, 1], strides = [1, 1]} : vector<8x5xf32> to vector<8x1xf32>
    %249 = vector.broadcast %248 : vector<8x1xf32> to vector<8x20xf32>
    %250 = arith.mulf %249, %12 : vector<8x20xf32>
    %251 = arith.addf %247, %250 : vector<8x20xf32>
    %252 = vector.extract_strided_slice %242 {offsets = [0, 2], sizes = [8, 1], strides = [1, 1]} : vector<8x5xf32> to vector<8x1xf32>
    %253 = vector.broadcast %252 : vector<8x1xf32> to vector<8x20xf32>
    %254 = arith.mulf %253, %15 : vector<8x20xf32>
    %255 = arith.addf %251, %254 : vector<8x20xf32>
    %256 = vector.extract_strided_slice %242 {offsets = [0, 3], sizes = [8, 1], strides = [1, 1]} : vector<8x5xf32> to vector<8x1xf32>
    %257 = vector.broadcast %256 : vector<8x1xf32> to vector<8x20xf32>
    %258 = arith.mulf %257, %18 : vector<8x20xf32>
    %259 = arith.addf %255, %258 : vector<8x20xf32>
    %260 = vector.extract_strided_slice %242 {offsets = [0, 4], sizes = [8, 1], strides = [1, 1]} : vector<8x5xf32> to vector<8x1xf32>
    %261 = vector.broadcast %260 : vector<8x1xf32> to vector<8x20xf32>
    %262 = arith.mulf %261, %21 : vector<8x20xf32>
    %263 = arith.addf %259, %262 : vector<8x20xf32>
    %264 = arith.mulf %263, %30 : vector<8x20xf32>
    %265 = math.tanh %264 : vector<8x20xf32>
    %266 = arith.mulf %33, %265 : vector<8x20xf32>
    %267 = arith.addf %266, %36 : vector<8x20xf32>
    %268 = vector.extract_strided_slice %267 {offsets = [0, 0], sizes = [8, 5], strides = [1, 1]} : vector<8x20xf32> to vector<8x5xf32>
    %269 = vector.extract_strided_slice %267 {offsets = [0, 5], sizes = [8, 5], strides = [1, 1]} : vector<8x20xf32> to vector<8x5xf32>
    %270 = vector.extract_strided_slice %267 {offsets = [0, 10], sizes = [8, 5], strides = [1, 1]} : vector<8x20xf32> to vector<8x5xf32>
    %271 = vector.extract_strided_slice %267 {offsets = [0, 15], sizes = [8, 5], strides = [1, 1]} : vector<8x20xf32> to vector<8x5xf32>
    %272 = arith.mulf %269, %240 : vector<8x5xf32>
    %273 = arith.mulf %268, %270 : vector<8x5xf32>
    %274 = arith.addf %272, %273 : vector<8x5xf32>
    %275 = math.tanh %274 : vector<8x5xf32>
    %276 = arith.mulf %271, %275 : vector<8x5xf32>
    %277 = vector.extract_strided_slice %6 {offsets = [56, 0], sizes = [8, 20], strides = [1, 1]} : vector<64x20xf32> to vector<8x20xf32>
    %278 = vector.extract_strided_slice %276 {offsets = [0, 0], sizes = [8, 1], strides = [1, 1]} : vector<8x5xf32> to vector<8x1xf32>
    %279 = vector.broadcast %278 : vector<8x1xf32> to vector<8x20xf32>
    %280 = arith.mulf %279, %9 : vector<8x20xf32>
    %281 = arith.addf %277, %280 : vector<8x20xf32>
    %282 = vector.extract_strided_slice %276 {offsets = [0, 1], sizes = [8, 1], strides = [1, 1]} : vector<8x5xf32> to vector<8x1xf32>
    %283 = vector.broadcast %282 : vector<8x1xf32> to vector<8x20xf32>
    %284 = arith.mulf %283, %12 : vector<8x20xf32>
    %285 = arith.addf %281, %284 : vector<8x20xf32>
    %286 = vector.extract_strided_slice %276 {offsets = [0, 2], sizes = [8, 1], strides = [1, 1]} : vector<8x5xf32> to vector<8x1xf32>
    %287 = vector.broadcast %286 : vector<8x1xf32> to vector<8x20xf32>
    %288 = arith.mulf %287, %15 : vector<8x20xf32>
    %289 = arith.addf %285, %288 : vector<8x20xf32>
    %290 = vector.extract_strided_slice %276 {offsets = [0, 3], sizes = [8, 1], strides = [1, 1]} : vector<8x5xf32> to vector<8x1xf32>
    %291 = vector.broadcast %290 : vector<8x1xf32> to vector<8x20xf32>
    %292 = arith.mulf %291, %18 : vector<8x20xf32>
    %293 = arith.addf %289, %292 : vector<8x20xf32>
    %294 = vector.extract_strided_slice %276 {offsets = [0, 4], sizes = [8, 1], strides = [1, 1]} : vector<8x5xf32> to vector<8x1xf32>
    %295 = vector.broadcast %294 : vector<8x1xf32> to vector<8x20xf32>
    %296 = arith.mulf %295, %21 : vector<8x20xf32>
    %297 = arith.addf %293, %296 : vector<8x20xf32>
    %298 = arith.mulf %297, %30 : vector<8x20xf32>
    %299 = math.tanh %298 : vector<8x20xf32>
    %300 = arith.mulf %33, %299 : vector<8x20xf32>
    %301 = arith.addf %300, %36 : vector<8x20xf32>
    %302 = vector.extract_strided_slice %301 {offsets = [0, 0], sizes = [8, 5], strides = [1, 1]} : vector<8x20xf32> to vector<8x5xf32>
    %303 = vector.extract_strided_slice %301 {offsets = [0, 5], sizes = [8, 5], strides = [1, 1]} : vector<8x20xf32> to vector<8x5xf32>
    %304 = vector.extract_strided_slice %301 {offsets = [0, 10], sizes = [8, 5], strides = [1, 1]} : vector<8x20xf32> to vector<8x5xf32>
    %305 = vector.extract_strided_slice %301 {offsets = [0, 15], sizes = [8, 5], strides = [1, 1]} : vector<8x20xf32> to vector<8x5xf32>
    %306 = arith.mulf %303, %274 : vector<8x5xf32>
    %307 = arith.mulf %302, %304 : vector<8x5xf32>
    %308 = arith.addf %306, %307 : vector<8x5xf32>
    %309 = math.tanh %308 : vector<8x5xf32>
    %310 = arith.mulf %305, %309 : vector<8x5xf32>
    %311 = vector.extract_strided_slice %0 {offsets = [56, 0], sizes = [8, 5], strides = [1, 1]} : vector<64x5xf32> to vector<8x5xf32>
    %312 = arith.addf %310, %311 : vector<8x5xf32>
    %c24 = arith.constant 24 : index
    %c0_13 = arith.constant 0 : index
    %313 = vector.load %arg1[%c24, %c0_13] : memref<120x32xf32, #tpu.memory_space<vmem>>, vector<5x32xf32>
    %c32 = arith.constant 32 : index
    %c0_14 = arith.constant 0 : index
    %314 = vector.load %arg1[%c32, %c0_14] : memref<120x32xf32, #tpu.memory_space<vmem>>, vector<1x32xf32>
    %c40 = arith.constant 40 : index
    %c0_15 = arith.constant 0 : index
    %315 = vector.load %arg1[%c40, %c0_15] : memref<120x32xf32, #tpu.memory_space<vmem>>, vector<32x32xf32>
    %c72 = arith.constant 72 : index
    %c0_16 = arith.constant 0 : index
    %316 = vector.load %arg1[%c72, %c0_16] : memref<120x32xf32, #tpu.memory_space<vmem>>, vector<1x32xf32>
    %c80 = arith.constant 80 : index
    %c0_17 = arith.constant 0 : index
    %317 = vector.load %arg1[%c80, %c0_17] : memref<120x32xf32, #tpu.memory_space<vmem>>, vector<32x5xf32>
    %c112 = arith.constant 112 : index
    %c0_18 = arith.constant 0 : index
    %318 = vector.load %arg1[%c112, %c0_18] : memref<120x32xf32, #tpu.memory_space<vmem>>, vector<1x5xf32>
    %cst_19 = arith.constant dense<0.000000e+00> : vector<8x32xf32>
    %319 = tpu.matmul %312, %313, %cst_19 {dimension_numbers = #tpu.dot_dimension_numbers<[1], [0], [0], [1], [0, 0, 1, 1], [], []>} : vector<8x5xf32>, vector<5x32xf32>, vector<8x32xf32> -> vector<8x32xf32>
    %320 = vector.broadcast %314 : vector<1x32xf32> to vector<8x32xf32>
    %321 = arith.addf %319, %320 : vector<8x32xf32>
    %cst_20 = arith.constant 0.000000e+00 : f32
    %322 = vector.broadcast %cst_20 : f32 to vector<8x32xf32>
    %323 = arith.maximumf %321, %322 : vector<8x32xf32>
    %cst_21 = arith.constant dense<0.000000e+00> : vector<8x32xf32>
    %324 = tpu.matmul %323, %315, %cst_21 {dimension_numbers = #tpu.dot_dimension_numbers<[1], [0], [0], [1], [0, 0, 1, 1], [], []>} : vector<8x32xf32>, vector<32x32xf32>, vector<8x32xf32> -> vector<8x32xf32>
    %325 = vector.broadcast %316 : vector<1x32xf32> to vector<8x32xf32>
    %326 = arith.addf %324, %325 : vector<8x32xf32>
    %cst_22 = arith.constant 0.000000e+00 : f32
    %327 = vector.broadcast %cst_22 : f32 to vector<8x32xf32>
    %328 = arith.maximumf %326, %327 : vector<8x32xf32>
    %cst_23 = arith.constant dense<0.000000e+00> : vector<8x5xf32>
    %329 = tpu.matmul %328, %317, %cst_23 {dimension_numbers = #tpu.dot_dimension_numbers<[1], [0], [0], [1], [0, 0, 1, 1], [], []>} : vector<8x32xf32>, vector<32x5xf32>, vector<8x5xf32> -> vector<8x5xf32>
    %330 = vector.broadcast %318 : vector<1x5xf32> to vector<8x5xf32>
    %331 = arith.addf %329, %330 : vector<8x5xf32>
    %c0_24 = arith.constant 0 : index
    %c0_25 = arith.constant 0 : index
    %332 = vector.load %arg2[%c0_24, %c0_25] : memref<8x5xf32, #tpu.memory_space<vmem>>, vector<8x5xf32>
    tpu.vector_store %arg2[%c0_24, %c0_25], %331 {strides = array<i32>} : memref<8x5xf32, #tpu.memory_space<vmem>>, vector<8x5xf32>,
    return
  }
}

</mosaic_0001>

<bundles_post_ra>
// kernel: tpu_custom_call.1
= control target key start
LH: loop header
LB: loop body
LE: loop exit
PB: predicated region body
PF: predicated region fallthrough
CT: control target
= control target key end

     0   :  { %vm49_vm0 = vcmask 1044480   ;;  %vm24_vm1 = vcmask 39936   ;;  %s990_s0 = inlined_call_operand.vmem [shape: f32[64,5], index: 0, kind: input, shape index: {}]   ;;  %s991_s1 = inlined_call_operand.vmem [shape: f32[120,32], index: 1, kind: input, shape index: {}]   ;;  %s992_s2 = inlined_call_operand.hbm [shape: f32[8,5], index: 2, kind: output, shape index: {}]  }
   0x1   :  { %v20_v0 = vld [vmem:[%s991_s1] sm:$0x1f] }
   0x2   :  { %v12_v1 = vld [vmem:[%s990_s0] sm:$0xff]  ;;  %614 = vmatpush.msk.msra.mxu0 %vm49_vm0, %v20_v0  ;;  %627 = vmatpush.msk.msra.mxu1 %vm49_vm0, %v20_v0 }
   0x3   :  { %615 = vmatmul.msk.f32.vlgmr.msra.gmra.mxu0 %vm24_vm1, %v12_v1  ;;  %628 = vmatpush.msk.msra.mxu2 %vm49_vm0, %v20_v0 }
   0x4   :  { %629 = vmatpush.msk.msra.mxu3 %vm49_vm0, %v20_v0 }
   0x5   :  { %7 = vsyncpa [#allocation3], 0  ;;  %v21_v2 = vld [vmem:[%s991_s1 + $0x8] sm:$0x1f]  ;;  %v99_v4 = vlaneseq  ;;  %v780_v5 = vld [vmem:[%s991_s1 + $0x10] ss:$0 sm:$0xff] }
   0x6   :  { %v775_v3 = vperm.slane %v21_v2, 0  ;;  %v782_v6 = vperm.slane %v21_v2, 1  ;;  %v784_v7 = vperm.slane %v21_v2, 2  ;;  %v788_v12 = vperm.slane %v21_v2, 3  ;;  %s735_s17 = smov 118   ;;  %s736_s18 = smov 5  }
   0x7   :  { %v100_v10 = vand.u32 127, %v99_v4  ;;  %v791_v14 = vperm.slane %v21_v2, 4  ;;  %v734_v22 = vmov 0.5   ;;  %v13_v32 = vld [vmem:[%s990_s0 + $0x8] sm:$0xff]  ;;  %s737_s21 = smov 10   ;;  %v738_v37 = vmov 18  }
   0x8   :  { %v106_v8 = vmul.f32 0.0, %v775_v3  ;;  %v108_v13 = vmul.f32 0.0, %v782_v6  ;;  %v110_v16 = vmul.f32 0.0, %v784_v7  ;;  %v112_v18 = vmul.f32 0.0, %v788_v12  ;;  %645 = vset.pattern.permute.xlu0 %v738_v37  ;;  %v14_v4 = vld [vmem:[%s990_s0 + $0x10] sm:$0xff]  ;;  %s744_s8 = smov 113  }
   0x9   :  { %vm101_vm2 = vcmp.ge.s32.totalorder %v100_v10, 10  ;;  %vm102_vm3 = vcmp.lt.s32.totalorder %v100_v10, 15  ;;  %v114_v20 = vmul.f32 0.0, %v791_v14  ;;  %v739_v38 = vmov 16   ;;  %s745_s3 = smov [#allocation2]   ;;  %s605_s6 = sshll.u32 %s992_s2, 4  ;;  %s606_s6 = int_to_ptr.hbm [resolvable:$true] %s605_s6 }
   0xa   :  { %vm103_vm4 = vmand %vm101_vm2, %vm102_vm3  ;;  %643 = vset.pattern.permute.xlu2 %v739_v38  ;;  %v740_v39 = vmov 15   ;;  %v741_v42 = vmov 17   ;;  %v742_v43 = vmov 19   ;;  %vm548_vm5 = vcmask 261120   ;;  %s603_s4 = sshll.u32 %s745_s3, 4  ;;  %s604_s4 = int_to_ptr.vmem [resolvable:$true] %s603_s4 }
   0xb   :  { %v796_v23 = vsel %vm103_vm4, 1.0, %v734_v22  ;;  %v799_v27 = vsel %vm103_vm4, 0.0, %v734_v22  ;;  %616 = vmatmul.msk.f32.gmra.mxu0 %vm24_vm1, %v13_v32  ;;  %642 = vset.pattern.permute.xlu1 %v740_v39 }
  0x13   :  { %617 = vmatmul.msk.f32.gmra.mxu0 %vm24_vm1, %v14_v4 }
  0x80   :  { %v70_v9 = vpop.f32.mrf.mxu0 }
  0x81   :  { %v71_v11 = vadd.f32 %v780_v5, %v70_v9 }
  0x83   :  { %v107_v15 = vadd.f32 %v106_v8, %v71_v11 }
  0x85   :  { %v109_v17 = vadd.f32 %v108_v13, %v107_v15 }
  0x87   :  { %v111_v19 = vadd.f32 %v110_v16, %v109_v17 }
  0x88   :  { %v73_v45 = vpop.f32.mrf.mxu0 }
  0x89   :  { %v113_v21 = vadd.f32 %v112_v18, %v111_v19  ;;  %v74_v46 = vadd.f32 %v780_v5, %v73_v45 }
  0x8b   :  { %v115_v24 = vadd.f32 %v114_v20, %v113_v21 }
  0x8d   :  { %v116_v25 = vmul.f32 %v115_v24, %v796_v23 }
  0x8f   :  { %676 = vtanh.f32 %v116_v25 }
  0x90   :  { %v76_v16 = vpop.f32.mrf.mxu0 }
  0x91   :  { %v77_v18 = vadd.f32 %v780_v5, %v76_v16 }
  0x95   :  { %v677_v26 = vpop.eup %676 }
  0x96   :  { %v118_v28 = vmul.f32 %v677_v26, %v796_v23 }
  0x98   :  { %v119_v29 = vadd.f32 %v118_v28, %v799_v27 }
  0x9a   :  { %122 = vrot.lane.b32.xlu0 %v119_v29, %s735_s17  ;;  %v120_v33 = vmul.f32 0.0, %v119_v29 }
 0x10c   :  { %v123_v30 = vpop.permute.xlu0 %122 }
 0x10d   :  { %v125_v31 = vmul.f32 %v123_v30, %v119_v29 }
 0x10f   :  { %127 = vrot.lane.b32.xlu0 %v125_v31, %s736_s18 }
 0x181   :  { %v128_v34 = vpop.permute.xlu0 %127 }
 0x182   :  { %v130_v35 = vadd.f32 %v128_v34, %v120_v33 }
 0x184   :  { %678 = vtanh.f32 %v130_v35 }
 0x18a   :  { %v679_v36 = vpop.eup %678 }
 0x18b   :  { %133 = vrot.lane.b32.xlu1 %v679_v36, %s737_s21 }
 0x1fd   :  { %v134_v40 = vpop.permute.xlu1 %133 }
 0x1fe   :  { %v136_v41 = vmul.f32 %v134_v40, %v119_v29 }
 0x200   :  { %157 = vperm.xlu0 %645, %v136_v41   ;;  %145 = vperm.xlu2 %643, %v136_v41  }
 0x201   :  { %139 = vperm.xlu1 %642, %v136_v41  }
 0x208   :  { %644 = vset.pattern.permute.xlu2 %v741_v42  ;;  %647 = vset.pattern.permute.xlu0 %v740_v39 }
 0x209   :  { %646 = vset.pattern.permute.xlu1 %v742_v43  ;;  %151 = vperm.xlu2 %644, %v136_v41  }
 0x20a   :  { %163 = vperm.xlu1 %646, %v136_v41  }
 0x212   :  { %648 = vset.pattern.permute.xlu1 %v739_v38 }
 0x25a   :  { %v146_v44 = vpop.permute.xlu2 %145 }
 0x25b   :  { %v148_v50 = vmul.f32 %v146_v44, %v782_v6 }
 0x263   :  { %v152_v49 = vpop.permute.xlu2 %151 }
 0x264   :  { %v154_v53 = vmul.f32 %v152_v49, %v784_v7 }
 0x272   :  { %v158_v52 = vpop.permute.xlu0 %157 }
 0x273   :  { %v140_v47 = vpop.permute.xlu1 %139  ;;  %v160_v55 = vmul.f32 %v158_v52, %v788_v12 }
 0x274   :  { %v142_v48 = vmul.f32 %v140_v47, %v775_v3 }
 0x276   :  { %v143_v51 = vadd.f32 %v142_v48, %v74_v46  ;;  %v15_v46 = vld [vmem:[%s990_s0 + $0x18] sm:$0xff] }
 0x277   :  { %618 = vmatmul.msk.f32.vlgmr.msra.gmra.mxu1 %vm24_vm1, %v15_v46 }
 0x278   :  { %v149_v54 = vadd.f32 %v148_v50, %v143_v51 }
 0x27a   :  { %v155_v56 = vadd.f32 %v154_v53, %v149_v54 }
 0x27c   :  { %v161_v57 = vadd.f32 %v160_v55, %v155_v56  ;;  %v164_v58 = vpop.permute.xlu1 %163 }
 0x27d   :  { %v166_v59 = vmul.f32 %v164_v58, %v791_v14 }
 0x27f   :  { %v167_v60 = vadd.f32 %v166_v59, %v161_v57 }
 0x281   :  { %v168_v61 = vmul.f32 %v167_v60, %v796_v23 }
 0x283   :  { %680 = vtanh.f32 %v168_v61 }
 0x289   :  { %v681_v62 = vpop.eup %680 }
 0x28a   :  { %v170_v63 = vmul.f32 %v681_v62, %v796_v23 }
 0x28c   :  { %v171_v0 = vadd.f32 %v170_v63, %v799_v27 }
 0x28e   :  { %174 = vrot.lane.b32.xlu2 %v171_v0, %s735_s17  ;;  %v172_v8 = vmul.f32 %v171_v0, %v130_v35 }
 0x2e8   :  { %v175_v1 = vpop.permute.xlu2 %174 }
 0x2e9   :  { %v177_v2 = vmul.f32 %v175_v1, %v171_v0 }
 0x2eb   :  { %179 = vrot.lane.b32.xlu1 %v177_v2, %s736_s18 }
 0x2f4   :  { %v79_v53 = vpop.f32.mrf.mxu1 }
 0x2f5   :  { %v80_v54 = vadd.f32 %v780_v5, %v79_v53 }
 0x35d   :  { %v180_v9 = vpop.permute.xlu1 %179 }
 0x35e   :  { %v182_v10 = vadd.f32 %v180_v9, %v172_v8 }
 0x360   :  { %682 = vtanh.f32 %v182_v10 }
 0x366   :  { %v683_v11 = vpop.eup %682 }
 0x367   :  { %185 = vrot.lane.b32.xlu2 %v683_v11, %s737_s21 }
 0x3c1   :  { %v186_v13 = vpop.permute.xlu2 %185 }
 0x3c2   :  { %v188_v15 = vmul.f32 %v186_v13, %v171_v0 }
 0x3c4   :  { %203 = vperm.xlu2 %644, %v188_v15   ;;  %197 = vperm.xlu1 %648, %v188_v15  }
 0x3c5   :  { %191 = vperm.xlu0 %647, %v188_v15  }
 0x3cc   :  { %650 = vset.pattern.permute.xlu2 %v742_v43  ;;  %649 = vset.pattern.permute.xlu1 %v738_v37 }
 0x3cd   :  { %215 = vperm.xlu2 %650, %v188_v15   ;;  %209 = vperm.xlu1 %649, %v188_v15  }
 0x3d5   :  { %652 = vset.pattern.permute.xlu2 %v741_v42  ;;  %651 = vset.pattern.permute.xlu1 %v739_v38 }
 0x41e   :  { %v204_v17 = vpop.permute.xlu2 %203 }
 0x41f   :  { %v206_v26 = vmul.f32 %v204_v17, %v784_v7 }
 0x427   :  { %v216_v28 = vpop.permute.xlu2 %215 }
 0x428   :  { %v218_v32 = vmul.f32 %v216_v28, %v791_v14 }
 0x436   :  { %v198_v19 = vpop.permute.xlu1 %197 }
 0x437   :  { %v192_v20 = vpop.permute.xlu0 %191  ;;  %v200_v22 = vmul.f32 %v198_v19, %v782_v6 }
 0x438   :  { %v194_v21 = vmul.f32 %v192_v20, %v775_v3 }
 0x43a   :  { %v195_v24 = vadd.f32 %v194_v21, %v77_v18  ;;  %v16_v18 = vld [vmem:[%s990_s0 + $0x20] sm:$0xff] }
 0x43b   :  { %619 = vmatmul.msk.f32.gmra.mxu1 %vm24_vm1, %v16_v18 }
 0x43c   :  { %v201_v25 = vadd.f32 %v200_v22, %v195_v24 }
 0x43e   :  { %v207_v30 = vadd.f32 %v206_v26, %v201_v25 }
 0x43f   :  { %v210_v29 = vpop.permute.xlu1 %209 }
 0x440   :  { %v212_v31 = vmul.f32 %v210_v29, %v788_v12 }
 0x442   :  { %v213_v33 = vadd.f32 %v212_v31, %v207_v30 }
 0x444   :  { %v219_v34 = vadd.f32 %v218_v32, %v213_v33 }
 0x446   :  { %v220_v35 = vmul.f32 %v219_v34, %v796_v23 }
 0x448   :  { %684 = vtanh.f32 %v220_v35 }
 0x44e   :  { %v685_v36 = vpop.eup %684 }
 0x44f   :  { %v222_v40 = vmul.f32 %v685_v36, %v796_v23 }
 0x451   :  { %v223_v41 = vadd.f32 %v222_v40, %v799_v27 }
 0x453   :  { %226 = vrot.lane.b32.xlu0 %v223_v41, %s735_s17  ;;  %v224_v47 = vmul.f32 %v223_v41, %v182_v10 }
 0x4b8   :  { %v82_v26 = vpop.f32.mrf.mxu1 }
 0x4b9   :  { %v83_v29 = vadd.f32 %v780_v5, %v82_v26 }
 0x4c5   :  { %v227_v44 = vpop.permute.xlu0 %226 }
 0x4c6   :  { %v229_v45 = vmul.f32 %v227_v44, %v223_v41 }
 0x4c8   :  { %231 = vrot.lane.b32.xlu1 %v229_v45, %s736_s18 }
 0x53a   :  { %v232_v48 = vpop.permute.xlu1 %231 }
 0x53b   :  { %v234_v49 = vadd.f32 %v232_v48, %v224_v47 }
 0x53d   :  { %686 = vtanh.f32 %v234_v49 }
 0x543   :  { %v687_v50 = vpop.eup %686 }
 0x544   :  { %237 = vrot.lane.b32.xlu2 %v687_v50, %s737_s21 }
 0x59e   :  { %v238_v51 = vpop.permute.xlu2 %237 }
 0x59f   :  { %v240_v52 = vmul.f32 %v238_v51, %v223_v41 }
 0x5a1   :  { %255 = vperm.xlu2 %652, %v240_v52   ;;  %249 = vperm.xlu1 %651, %v240_v52  }
 0x5a2   :  { %243 = vperm.xlu0 %647, %v240_v52  }
 0x5a9   :  { %654 = vset.pattern.permute.xlu1 %v742_v43 }
 0x5aa   :  { %653 = vset.pattern.permute.xlu0 %v738_v37  ;;  %267 = vperm.xlu1 %654, %v240_v52  }
 0x5ab   :  { %261 = vperm.xlu0 %653, %v240_v52  }
 0x5b2   :  { %656 = vset.pattern.permute.xlu1 %v739_v38 }
 0x5b3   :  { %655 = vset.pattern.permute.xlu0 %v740_v39 }
 0x5fb   :  { %v256_v60 = vpop.permute.xlu2 %255 }
 0x5fc   :  { %v258_v62 = vmul.f32 %v256_v60, %v784_v7 }
 0x613   :  { %v250_v55 = vpop.permute.xlu1 %249 }
 0x614   :  { %v244_v56 = vpop.permute.xlu0 %243  ;;  %v252_v59 = vmul.f32 %v250_v55, %v782_v6  ;;  %v17_v55 = vld [vmem:[%s990_s0 + $0x28] sm:$0xff] }
 0x615   :  { %v246_v57 = vmul.f32 %v244_v56, %v775_v3  ;;  %620 = vmatmul.msk.f32.vlgmr.msra.gmra.mxu2 %vm24_vm1, %v17_v55 }
 0x617   :  { %v247_v58 = vadd.f32 %v246_v57, %v80_v54 }
 0x619   :  { %v253_v61 = vadd.f32 %v252_v59, %v247_v58 }
 0x61b   :  { %v259_v1 = vadd.f32 %v258_v62, %v253_v61 }
 0x61c   :  { %v268_v63 = vpop.permute.xlu1 %267 }
 0x61d   :  { %v262_v0 = vpop.permute.xlu0 %261  ;;  %v270_v4 = vmul.f32 %v268_v63, %v791_v14 }
 0x61e   :  { %v264_v2 = vmul.f32 %v262_v0, %v788_v12 }
 0x620   :  { %v265_v8 = vadd.f32 %v264_v2, %v259_v1 }
 0x622   :  { %v271_v9 = vadd.f32 %v270_v4, %v265_v8 }
 0x624   :  { %v272_v10 = vmul.f32 %v271_v9, %v796_v23 }
 0x626   :  { %688 = vtanh.f32 %v272_v10 }
 0x62c   :  { %v689_v11 = vpop.eup %688 }
 0x62d   :  { %v274_v13 = vmul.f32 %v689_v11, %v796_v23 }
 0x62f   :  { %v275_v15 = vadd.f32 %v274_v13, %v799_v27 }
 0x631   :  { %278 = vrot.lane.b32.xlu2 %v275_v15, %s735_s17  ;;  %v276_v19 = vmul.f32 %v275_v15, %v234_v49 }
 0x68b   :  { %v279_v16 = vpop.permute.xlu2 %278 }
 0x68c   :  { %v281_v17 = vmul.f32 %v279_v16, %v275_v15 }
 0x68e   :  { %283 = vrot.lane.b32.xlu1 %v281_v17, %s736_s18 }
 0x698   :  { %v85_v62 = vpop.f32.mrf.mxu2 }
 0x699   :  { %v86_v63 = vadd.f32 %v780_v5, %v85_v62 }
 0x700   :  { %v284_v20 = vpop.permute.xlu1 %283 }
 0x701   :  { %v286_v21 = vadd.f32 %v284_v20, %v276_v19 }
 0x703   :  { %690 = vtanh.f32 %v286_v21 }
 0x709   :  { %v691_v22 = vpop.eup %690 }
 0x70a   :  { %289 = vrot.lane.b32.xlu2 %v691_v22, %s737_s21 }
 0x764   :  { %v290_v24 = vpop.permute.xlu2 %289 }
 0x765   :  { %v292_v25 = vmul.f32 %v290_v24, %v275_v15 }
 0x767   :  { %307 = vperm.xlu2 %652, %v292_v25   ;;  %301 = vperm.xlu1 %656, %v292_v25  }
 0x768   :  { %295 = vperm.xlu0 %655, %v292_v25  }
 0x76f   :  { %658 = vset.pattern.permute.xlu2 %v742_v43  ;;  %657 = vset.pattern.permute.xlu1 %v738_v37 }
 0x770   :  { %319 = vperm.xlu2 %658, %v292_v25   ;;  %313 = vperm.xlu1 %657, %v292_v25  }
 0x778   :  { %660 = vset.pattern.permute.xlu2 %v741_v42  ;;  %659 = vset.pattern.permute.xlu1 %v739_v38 }
 0x7c1   :  { %v308_v28 = vpop.permute.xlu2 %307 }
 0x7c2   :  { %v310_v36 = vmul.f32 %v308_v28, %v784_v7  ;;  %v18_v28 = vld [vmem:[%s990_s0 + $0x30] sm:$0xff] }
 0x7c3   :  { %621 = vmatmul.msk.f32.gmra.mxu2 %vm24_vm1, %v18_v28 }
 0x7ca   :  { %v320_v40 = vpop.permute.xlu2 %319 }
 0x7cb   :  { %v322_v46 = vmul.f32 %v320_v40, %v791_v14 }
 0x7d9   :  { %v302_v30 = vpop.permute.xlu1 %301 }
 0x7da   :  { %v296_v31 = vpop.permute.xlu0 %295  ;;  %v304_v33 = vmul.f32 %v302_v30, %v782_v6 }
 0x7db   :  { %v298_v32 = vmul.f32 %v296_v31, %v775_v3 }
 0x7dd   :  { %v299_v34 = vadd.f32 %v298_v32, %v83_v29 }
 0x7df   :  { %v305_v35 = vadd.f32 %v304_v33, %v299_v34 }
 0x7e1   :  { %v311_v44 = vadd.f32 %v310_v36, %v305_v35 }
 0x7e2   :  { %v314_v41 = vpop.permute.xlu1 %313 }
 0x7e3   :  { %v316_v45 = vmul.f32 %v314_v41, %v788_v12 }
 0x7e5   :  { %v317_v47 = vadd.f32 %v316_v45, %v311_v44 }
 0x7e7   :  { %v323_v48 = vadd.f32 %v322_v46, %v317_v47 }
 0x7e9   :  { %v324_v49 = vmul.f32 %v323_v48, %v796_v23 }
 0x7eb   :  { %692 = vtanh.f32 %v324_v49 }
 0x7f1   :  { %v693_v50 = vpop.eup %692 }
 0x7f2   :  { %v326_v51 = vmul.f32 %v693_v50, %v796_v23 }
 0x7f4   :  { %v327_v52 = vadd.f32 %v326_v51, %v799_v27 }
 0x7f6   :  { %330 = vrot.lane.b32.xlu0 %v327_v52, %s735_s17  ;;  %v328_v56 = vmul.f32 %v327_v52, %v286_v21 }
 0x846   :  { %v88_v35 = vpop.f32.mrf.mxu2 }
 0x847   :  { %v89_v40 = vadd.f32 %v780_v5, %v88_v35  ;;  %v508_v35 = vld [vmem:[%s991_s1 + $0x30] sm:$0xff] }
 0x868   :  { %v331_v53 = vpop.permute.xlu0 %330 }
 0x869   :  { %v333_v54 = vmul.f32 %v331_v53, %v327_v52 }
 0x86b   :  { %335 = vrot.lane.b32.xlu1 %v333_v54, %s736_s18 }
 0x8dd   :  { %v336_v57 = vpop.permute.xlu1 %335 }
 0x8de   :  { %v338_v58 = vadd.f32 %v336_v57, %v328_v56 }
 0x8e0   :  { %694 = vtanh.f32 %v338_v58 }
 0x8e6   :  { %v695_v59 = vpop.eup %694 }
 0x8e7   :  { %341 = vrot.lane.b32.xlu2 %v695_v59, %s737_s21 }
 0x941   :  { %v342_v60 = vpop.permute.xlu2 %341 }
 0x942   :  { %v344_v61 = vmul.f32 %v342_v60, %v327_v52 }
 0x944   :  { %359 = vperm.xlu2 %660, %v344_v61   ;;  %353 = vperm.xlu1 %659, %v344_v61  }
 0x945   :  { %347 = vperm.xlu0 %655, %v344_v61  }
 0x94c   :  { %662 = vset.pattern.permute.xlu1 %v742_v43 }
 0x94d   :  { %661 = vset.pattern.permute.xlu0 %v738_v37  ;;  %371 = vperm.xlu1 %662, %v344_v61  }
 0x94e   :  { %365 = vperm.xlu0 %661, %v344_v61   ;;  %v19_v61 = vld [vmem:[%s990_s0 + $0x38] sm:$0xff]  ;;  %s743_s0 = smov 15  }
 0x94f   :  { %622 = vmatmul.msk.f32.vlgmr.msra.gmra.mxu3 %vm24_vm1, %v19_v61 }
 0x955   :  { %664 = vset.pattern.permute.xlu1 %v739_v38 }
 0x956   :  { %663 = vset.pattern.permute.xlu0 %v740_v39 }
 0x99e   :  { %v360_v9 = vpop.permute.xlu2 %359 }
 0x99f   :  { %v362_v11 = vmul.f32 %v360_v9, %v784_v7 }
 0x9b6   :  { %v354_v0 = vpop.permute.xlu1 %353 }
 0x9b7   :  { %v348_v1 = vpop.permute.xlu0 %347  ;;  %v356_v8 = vmul.f32 %v354_v0, %v782_v6 }
 0x9b8   :  { %v350_v2 = vmul.f32 %v348_v1, %v775_v3 }
 0x9ba   :  { %v351_v4 = vadd.f32 %v350_v2, %v86_v63 }
 0x9bc   :  { %v357_v10 = vadd.f32 %v356_v8, %v351_v4 }
 0x9be   :  { %v363_v16 = vadd.f32 %v362_v11, %v357_v10 }
 0x9bf   :  { %v372_v13 = vpop.permute.xlu1 %371 }
 0x9c0   :  { %v366_v15 = vpop.permute.xlu0 %365  ;;  %v374_v39 = vmul.f32 %v372_v13, %v791_v14 }
 0x9c1   :  { %v368_v17 = vmul.f32 %v366_v15, %v788_v12 }
 0x9c3   :  { %v369_v18 = vadd.f32 %v368_v17, %v363_v16 }
 0x9c5   :  { %v375_v19 = vadd.f32 %v374_v39, %v369_v18 }
 0x9c7   :  { %v376_v20 = vmul.f32 %v375_v19, %v796_v23 }
 0x9c9   :  { %696 = vtanh.f32 %v376_v20 }
 0x9cf   :  { %v697_v21 = vpop.eup %696 }
 0x9d0   :  { %v378_v22 = vmul.f32 %v697_v21, %v796_v23 }
 0x9d2   :  { %v379_v24 = vadd.f32 %v378_v22, %v799_v27  ;;  %v91_v8 = vpop.f32.mrf.mxu3 }
 0x9d3   :  { %v92_v9 = vadd.f32 %v780_v5, %v91_v8 }
 0x9d4   :  { %382 = vrot.lane.b32.xlu2 %v379_v24, %s735_s17  ;;  %v380_v29 = vmul.f32 %v379_v24, %v338_v58 }
 0xa2e   :  { %v383_v25 = vpop.permute.xlu2 %382 }
 0xa2f   :  { %v385_v26 = vmul.f32 %v383_v25, %v379_v24 }
 0xa31   :  { %387 = vrot.lane.b32.xlu1 %v385_v26, %s736_s18 }
 0xaa3   :  { %v388_v30 = vpop.permute.xlu1 %387 }
 0xaa4   :  { %v390_v31 = vadd.f32 %v388_v30, %v380_v29  ;;  %v505_v30 = vld [vmem:[%s991_s1 + $0x18] sm:$0x1f] }
 0xaa5   :  { %623 = vmatpush.msk.msrb.mxu1 %vm49_vm0, %v505_v30 }
 0xaa6   :  { %698 = vtanh.f32 %v390_v31 }
 0xaac   :  { %v699_v32 = vpop.eup %698 }
 0xaad   :  { %393 = vrot.lane.b32.xlu2 %v699_v32, %s737_s21 }
 0xb07   :  { %v394_v33 = vpop.permute.xlu2 %393 }
 0xb08   :  { %v396_v34 = vmul.f32 %v394_v33, %v379_v24  ;;  %v510_v33 = vld [vmem:[%s991_s1 + $0x40] sm:$0xff] }
 0xb09   :  { %564 = vmatpush.msrb.mxu2 %v510_v33 }
 0xb0a   :  { %411 = vperm.xlu2 %660, %v396_v34   ;;  %405 = vperm.xlu1 %664, %v396_v34  }
 0xb0b   :  { %399 = vperm.xlu0 %663, %v396_v34  }
 0xb12   :  { %666 = vset.pattern.permute.xlu2 %v742_v43  ;;  %665 = vset.pattern.permute.xlu1 %v738_v37 }
 0xb13   :  { %423 = vperm.xlu2 %666, %v396_v34   ;;  %417 = vperm.xlu1 %665, %v396_v34   ;;  %v509_v34 = vld [vmem:[%s991_s1 + $0x38] sm:$0xff] }
 0xb14   :  { %565 = vmatpush.msrb.mxu2 %v509_v34 }
 0xb16   :  { %566 = vmatpush.msrb.mxu2 %v508_v35 }
 0xb1b   :  { %668 = vset.pattern.permute.xlu2 %v741_v42  ;;  %667 = vset.pattern.permute.xlu1 %v739_v38 }
 0xb64   :  { %v412_v36 = vpop.permute.xlu2 %411 }
 0xb65   :  { %v414_v49 = vmul.f32 %v412_v36, %v784_v7 }
 0xb6d   :  { %v424_v50 = vpop.permute.xlu2 %423 }
 0xb6e   :  { %v426_v38 = vmul.f32 %v424_v50, %v791_v14  ;;  %v512_v50 = vld [vmem:[%s991_s1 + $0x50] sm:$0xff] }
 0xb7c   :  { %v406_v41 = vpop.permute.xlu1 %405 }
 0xb7d   :  { %v400_v44 = vpop.permute.xlu0 %399  ;;  %v408_v46 = vmul.f32 %v406_v41, %v782_v6  ;;  %v515_v41 = vld [vmem:[%s991_s1 + $0x68] sm:$0xff] }
 0xb7e   :  { %v402_v45 = vmul.f32 %v400_v44, %v775_v3  ;;  %v514_v44 = vld [vmem:[%s991_s1 + $0x60] sm:$0xff]  ;;  %589 = vmatpush.msrb.mxu3 %v515_v41 }
 0xb80   :  { %v403_v47 = vadd.f32 %v402_v45, %v89_v40  ;;  %v507_v40 = vld [vmem:[%s991_s1 + $0x28] sm:$0xff]  ;;  %590 = vmatpush.msrb.mxu3 %v514_v44  ;;  %v673_v45 = vld [vmem:[%s991_s1 + $0x20] ss:$0 sm:$0xff] }
 0xb81   :  { %567 = vmatpush.msrb.mxu2 %v507_v40 }
 0xb82   :  { %v409_v48 = vadd.f32 %v408_v46, %v403_v47 }
 0xb84   :  { %v415_v52 = vadd.f32 %v414_v49, %v409_v48  ;;  %v513_v49 = vld [vmem:[%s991_s1 + $0x58] sm:$0xff] }
 0xb85   :  { %v418_v51 = vpop.permute.xlu1 %417  ;;  %591 = vmatpush.msrb.mxu3 %v513_v49 }
 0xb86   :  { %v420_v42 = vmul.f32 %v418_v51, %v788_v12  ;;  %v674_v51 = vld [vmem:[%s991_s1 + $0x48] ss:$0 sm:$0xff] }
 0xb87   :  { %592 = vmatpush.msrb.mxu3 %v512_v50 }
 0xb88   :  { %v421_v53 = vadd.f32 %v420_v42, %v415_v52 }
 0xb8a   :  { %v427_v54 = vadd.f32 %v426_v38, %v421_v53  ;;  %v675_v53 = vld [vmem:[%s991_s1 + $0x70] ss:$0 sm:$0xff] }
 0xb8c   :  { %v428_v55 = vmul.f32 %v427_v54, %v796_v23 }
 0xb8e   :  { %700 = vtanh.f32 %v428_v55 }
 0xb94   :  { %v701_v56 = vpop.eup %700 }
 0xb95   :  { %v430_v57 = vmul.f32 %v701_v56, %v796_v23 }
 0xb97   :  { %v431_v58 = vadd.f32 %v430_v57, %v799_v27 }
 0xb99   :  { %434 = vrot.lane.b32.xlu0 %v431_v58, %s735_s17  ;;  %v432_v62 = vmul.f32 %v431_v58, %v390_v31 }
 0xc0b   :  { %v435_v59 = vpop.permute.xlu0 %434 }
 0xc0c   :  { %v437_v60 = vmul.f32 %v435_v59, %v431_v58 }
 0xc0e   :  { %439 = vrot.lane.b32.xlu1 %v437_v60, %s736_s18 }
 0xc80   :  { %v440_v63 = vpop.permute.xlu1 %439 }
 0xc81   :  { %v442_v0 = vadd.f32 %v440_v63, %v432_v62 }
 0xc83   :  { %702 = vtanh.f32 %v442_v0 }
 0xc89   :  { %v703_v1 = vpop.eup %702 }
 0xc8a   :  { %445 = vrot.lane.b32.xlu2 %v703_v1, %s737_s21 }
 0xce4   :  { %v446_v2 = vpop.permute.xlu2 %445 }
 0xce5   :  { %v448_v4 = vmul.f32 %v446_v2, %v431_v58 }
 0xce7   :  { %463 = vperm.xlu2 %668, %v448_v4   ;;  %457 = vperm.xlu1 %667, %v448_v4  }
 0xce8   :  { %451 = vperm.xlu0 %663, %v448_v4  }
 0xcef   :  { %670 = vset.pattern.permute.xlu1 %v742_v43 }
 0xcf0   :  { %669 = vset.pattern.permute.xlu0 %v738_v37  ;;  %475 = vperm.xlu1 %670, %v448_v4  }
 0xcf1   :  { %469 = vperm.xlu0 %669, %v448_v4  }
 0xcf9   :  { %671 = vset.pattern.permute.xlu0 %v742_v43 }
 0xcfa   :  { %501 = vrot.lane.b32.xlu0 %v19_v61, %s743_s0 }
 0xd41   :  { %v464_v17 = vpop.permute.xlu2 %463 }
 0xd42   :  { %v466_v37 = vmul.f32 %v464_v17, %v784_v7 }
 0xd59   :  { %v458_v10 = vpop.permute.xlu1 %457 }
 0xd5a   :  { %v452_v11 = vpop.permute.xlu0 %451  ;;  %v460_v16 = vmul.f32 %v458_v10, %v782_v6 }
 0xd5b   :  { %v454_v13 = vmul.f32 %v452_v11, %v775_v3 }
 0xd5d   :  { %v455_v15 = vadd.f32 %v454_v13, %v92_v9 }
 0xd5f   :  { %v461_v39 = vadd.f32 %v460_v16, %v455_v15 }
 0xd61   :  { %v467_v20 = vadd.f32 %v466_v37, %v461_v39 }
 0xd62   :  { %v476_v18 = vpop.permute.xlu1 %475 }
 0xd63   :  { %v470_v19 = vpop.permute.xlu0 %469  ;;  %v478_v21 = vmul.f32 %v476_v18, %v791_v14 }
 0xd64   :  { %v472_v43 = vmul.f32 %v470_v19, %v788_v12 }
 0xd66   :  { %v473_v22 = vadd.f32 %v472_v43, %v467_v20 }
 0xd68   :  { %v479_v5 = vadd.f32 %v478_v21, %v473_v22 }
 0xd6a   :  { %v480_v24 = vmul.f32 %v479_v5, %v796_v23 }
 0xd6c   :  { %704 = vtanh.f32 %v480_v24 }
 0xd72   :  { %v705_v3 = vpop.eup %704 }
 0xd73   :  { %v482_v25 = vmul.f32 %v705_v3, %v796_v23 }
 0xd75   :  { %v483_v6 = vadd.f32 %v482_v25, %v799_v27  ;;  %v502_v27 = vpop.permute.xlu0 %501 }
 0xd77   :  { %486 = vrot.lane.b32.xlu2 %v483_v6, %s735_s17  ;;  %v484_v28 = vmul.f32 %v483_v6, %v442_v0 }
 0xdd1   :  { %v487_v7 = vpop.permute.xlu2 %486 }
 0xdd2   :  { %v489_v26 = vmul.f32 %v487_v7, %v483_v6 }
 0xdd4   :  { %491 = vrot.lane.b32.xlu1 %v489_v26, %s736_s18 }
 0xe46   :  { %v492_v12 = vpop.permute.xlu1 %491 }
 0xe47   :  { %v494_v29 = vadd.f32 %v492_v12, %v484_v28 }
 0xe49   :  { %706 = vtanh.f32 %v494_v29 }
 0xe4f   :  { %v707_v14 = vpop.eup %706 }
 0xe50   :  { %497 = vrot.lane.b32.xlu2 %v707_v14, %s737_s21 }
 0xeaa   :  { %v498_v23 = vpop.permute.xlu2 %497 }
 0xeab   :  { %v500_v31 = vmul.f32 %v498_v23, %v483_v6 }
 0xead   :  { %v504_v32 = vadd.f32 %v502_v27, %v500_v31 }
 0xeaf   :  { %519 = vrot.lane.b32.xlu1 %v504_v32, %s744_s8 }
 0xf21   :  { %v520_v36 = vpop.permute.xlu1 %519 }
 0xf22   :  { %624 = vmatmul.msk.f32.vlgmr.msrb.gmra.mxu1 %vm24_vm1, %v520_v36 }
 0xf9f   :  { %v543_v46 = vpop.f32.mrf.mxu1 }
 0xfa0   :  { %v544_v47 = vadd.f32 %v673_v45, %v543_v46 }
 0xfa2   :  { %v546_v48 = vmax.f32 %v544_v47, 0.0 }
 0xfa4   :  { %625 = vmatmul.msk.f32.vlgmr.msrb.gmra.mxu2 %vm548_vm5, %v546_v48 }
0x1027   :  { %v569_v52 = vpop.f32.mrf.mxu2 }
0x1028   :  { %v570_v42 = vadd.f32 %v674_v51, %v569_v52 }
0x102a   :  { %v572_v38 = vmax.f32 %v570_v42, 0.0 }
0x102c   :  { %626 = vmatmul.msk.f32.vlgmr.msrb.gmra.mxu3 %vm548_vm5, %v572_v38 }
0x10af   :  { %v594_v54 = vpop.f32.mrf.mxu3 }
0x10b0   :  { %v595_v55 = vadd.f32 %v675_v53, %v594_v54 }
0x10b2   :  { %597 = vst.msk [vmem:[#allocation2] sm:$0xff] %vm24_vm1, %v595_v55 }
0x10b3   :  { %608 = dma.vmem_to_hbm [thread:$0]  %s604_s4, 128, %s606_s6, [#allocation3]  }
0x10b4   :  { %732 = dma.done.wait [#allocation3], 128  }
0x10b5   :  { %733 = vsyncadd [#allocation3], 4294967168 }
0x10b6   :  { %613 = vsyncpa [#allocation3], 1 }

</bundles_post_ra>
